<compile_context>
chip_gen: v7x
topology: tpu7x:2x2x1
jax: 0.10.0
libtpu: 0.0.40
codegen_flags: <defaults>
</compile_context>

<pallas_src>
import jax
import jax.numpy as jnp
from jax import lax
from jax.experimental import pallas as pl
from jax.experimental.pallas import tpu as pltpu

EPS = 1e-5
LANE = 128
SUBLANE = 8
DEFAULT_MAX_TILE_ROWS = 2048  # multi-tile cap; plenty to amortize per-step overhead


def _round_up(x, m):
    return ((x + m - 1) // m) * m


def _vmem_budgets():
    """Returns (pipeline byte budget for the x/out row tiles, scoped VMEM limit)."""
    try:
        cap = int(pltpu.get_tpu_info().vmem_capacity_bytes)
    except Exception:
        cap = 64 * 1024 * 1024  # conservative fallback: v7x physical VMEM
    budget = max(4 * 1024 * 1024, min(int(cap * 0.4), 48 * 1024 * 1024))
    limit = max(32 * 1024 * 1024, min(int(cap * 0.75), 100 * 1024 * 1024))
    return budget, limit


def _pick_row_tile(n, d, o, budget_bytes, max_tile_rows):
    """Row-tile size from the VMEM budget (x + out tiles, double-buffered, f32)."""
    d_vmem = _round_up(d, LANE)   # VMEM lane padding (footprint only -- NOT HBM bytes)
    o_vmem = _round_up(o, LANE)
    bytes_per_row = 4 * 2 * (d_vmem + o_vmem)
    max_rows = max(SUBLANE, budget_bytes // bytes_per_row)
    if max_tile_rows is None:
        # Whole batch resident in one tile -> the x block index never changes
        # across the two phases, so x is DMA'd from HBM exactly once.
        if _round_up(n, SUBLANE) <= max_rows:
            return n, 1
        max_rows = min(max_rows, DEFAULT_MAX_TILE_ROWS)
    else:
        max_rows = min(max_rows, max(SUBLANE, max_tile_rows))
    if max_rows >= n:
        return n, 1
    tm = max(SUBLANE, (max_rows // SUBLANE) * SUBLANE)
    return tm, pl.cdiv(n, tm)


def _make_kernel(n_rows, tile_rows, compute_dtype):
    inv_n = 1.0 / float(n_rows)

    def kernel(x_ref, gamma_ref, beta_ref, w_ref, b_ref, out_ref,
               sum_sc, sumsq_sc, shift_sc, wfold_sc, bfold_sc):
        phase = pl.program_id(0)
        i = pl.program_id(1)
        last = pl.num_programs(1) - 1

        # ---- phase 0: batch statistics (shifted sums) + in-VMEM BN fold ----
        @pl.when(phase == 0)
        def _stats():
            @pl.when(i == 0)
            def _init():
                shift_sc[...] = x_ref[0:1, :]      # per-feature shift (~mean)
                sum_sc[...] = jnp.zeros_like(sum_sc)
                sumsq_sc[...] = jnp.zeros_like(sumsq_sc)

            x = x_ref[...]
            row = i * tile_rows + lax.broadcasted_iota(jnp.int32, x.shape, 0)
            xc = jnp.where(row < n_rows, x - shift_sc[...], 0.0)   # mask ragged tail
            sum_sc[...] += jnp.sum(xc, axis=0, keepdims=True)
            sumsq_sc[...] += jnp.sum(xc * xc, axis=0, keepdims=True)

            @pl.when(i == last)
            def _fold():
                mc = sum_sc[...] * inv_n                              # E[x - shift]
                var = jnp.maximum(sumsq_sc[...] * inv_n - mc * mc, 0.0)  # biased var
                mean = shift_sc[...] + mc
                s = gamma_ref[...] * lax.rsqrt(var + EPS)             # (1, D)
                wfold_sc[...] = (w_ref[...] * s).astype(compute_dtype)   # W' = W*s
                bfold_sc[...] = b_ref[...] + lax.dot_general(            # b' (1, O)
                    beta_ref[...] - mean * s, w_ref[...],
                    dimension_numbers=(((1,), (1,)), ((), ())),
                    preferred_element_type=jnp.float32)

        # ---- phase 1: hot path -- one MXU matmul with the folded params ----
        @pl.when(phase == 1)
        def _matmul():
            acc = lax.dot_general(
                x_ref[...].astype(compute_dtype), wfold_sc[...],
                dimension_numbers=(((1,), (1,)), ((), ())),
                preferred_element_type=jnp.float32)
            out_ref[...] = (acc + bfold_sc[...]).astype(out_ref.dtype)

    return kernel


def logistic_regression_forward(x, gamma, beta, weight, bias, *,
                                matmul_dtype=jnp.bfloat16, max_tile_rows=None):
    """BatchNorm1d (training-mode batch stats, eps=1e-5) followed by Linear.

    x: (N, D) ; gamma/beta: (D,) ; weight: (O, D) PyTorch layout ; bias: (O,).
    matmul_dtype: MXU operand dtype for the hot matmul (bf16 on v6e/v7x);
      statistics, fold and accumulation always stay f32.
    """
    x = jnp.asarray(x, jnp.float32)
    n, d = x.shape
    o = weight.shape[0]
    gamma2 = jnp.asarray(gamma, jnp.float32).reshape(1, d)
    beta2 = jnp.asarray(beta, jnp.float32).reshape(1, d)
    w = jnp.asarray(weight, jnp.float32)                      # (O, D)
    b2 = jnp.asarray(bias, jnp.float32).reshape(1, o)

    budget, vmem_limit = _vmem_budgets()
    tm, num_tiles = _pick_row_tile(n, d, o, budget, max_tile_rows)
    compute_dtype = jnp.dtype(matmul_dtype)
    kernel = _make_kernel(n, tm, compute_dtype)

    return pl.pallas_call(
        kernel,
        out_shape=jax.ShapeDtypeStruct((n, o), jnp.float32),
        grid=(2, num_tiles),                     # axis 0: phase, axis 1: row tiles
        in_specs=[
            pl.BlockSpec((tm, d), lambda p, i: (i, 0)),   # x  (true D: no lane pad)
            pl.BlockSpec((1, d), lambda p, i: (0, 0)),    # gamma
            pl.BlockSpec((1, d), lambda p, i: (0, 0)),    # beta
            pl.BlockSpec((o, d), lambda p, i: (0, 0)),    # weight (PyTorch layout)
            pl.BlockSpec((1, o), lambda p, i: (0, 0)),    # bias
        ],
        # During phase 0 the output block index is pinned to 0 so the (unwritten)
        # buffer is never flushed to HBM; phase 1 walks the row tiles normally.
        out_specs=pl.BlockSpec((tm, o), lambda p, i: (p * i, 0)),
        scratch_shapes=[
            pltpu.VMEM((1, d), jnp.float32),      # shifted sum
            pltpu.VMEM((1, d), jnp.float32),      # shifted sum of squares
            pltpu.VMEM((1, d), jnp.float32),      # shift (row 0 of x)
            pltpu.VMEM((o, d), compute_dtype),    # folded weight  W' = W*s
            pltpu.VMEM((1, o), jnp.float32),      # folded bias    b'
        ],
        compiler_params=pltpu.CompilerParams(
            dimension_semantics=("arbitrary", "arbitrary"),
            vmem_limit_bytes=vmem_limit),
    )(x, gamma2, beta2, w, b2)


def _reference(x, gamma, beta, weight, bias):
    mean = jnp.mean(x, axis=0, keepdims=True)
    var = jnp.mean((x - mean) ** 2, axis=0, keepdims=True)   # biased (training mode)
    y = (x - mean) / jnp.sqrt(var + EPS) * gamma + beta
    return jnp.einsum("nd,od->no", y, weight,
                      precision=jax.lax.Precision.HIGHEST) + bias


if __name__ == "__main__":
    key = jax.random.PRNGKey(0)
    k1, k2, k3, k4, k5, k6, k7 = jax.random.split(key, 7)

    # --- Test 1: deployment-like toy shape (f32 matmul path) ------------------
    n, d, o = 8, 32, 8
    x = jax.random.normal(k1, (n, d), dtype=jnp.float32)
    gamma = jnp.ones((d,), jnp.float32)          # PyTorch BatchNorm1d init
    beta = jnp.zeros((d,), jnp.float32)
    bound = 1.0 / (d ** 0.5)
    w = jax.random.uniform(k2, (o, d), minval=-bound, maxval=bound, dtype=jnp.float32)
    b = jax.random.uniform(k3, (o,), minval=-bound, maxval=bound, dtype=jnp.float32)

    out = jax.block_until_ready(
        logistic_regression_forward(x, gamma, beta, w, b, matmul_dtype=jnp.float32))
    ref = _reference(x, gamma, beta, w, b)
    assert out.shape == ref.shape, "shape mismatch vs reference"
    # tolerance covers MXU matmul precision modes; stats/fold are exact f32
    assert jnp.allclose(out, ref, atol=3e-2, rtol=3e-2), "toy-shape mismatch"

    # --- Test 2: larger ragged batch: multi-tile reduction, tail masking, bf16 -
    n, d, o = 1000, 96, 10
    x = 3.0 + 1.5 * jax.random.normal(k4, (n, d), dtype=jnp.float32)  # offset mean
    gamma = jax.random.uniform(k5, (d,), minval=0.5, maxval=1.5, dtype=jnp.float32)
    beta = jax.random.normal(k6, (d,), dtype=jnp.float32)
    bound = 1.0 / (d ** 0.5)
    kw, kb = jax.random.split(k7)
    w = jax.random.uniform(kw, (o, d), minval=-bound, maxval=bound, dtype=jnp.float32)
    b = jax.random.uniform(kb, (o,), minval=-bound, maxval=bound, dtype=jnp.float32)
    ref = _reference(x, gamma, beta, w, b)

    out_resident = jax.block_until_ready(          # whole batch in one resident tile
        logistic_regression_forward(x, gamma, beta, w, b, matmul_dtype=jnp.float32))
    out_tiled = jax.block_until_ready(             # 4 tiles of 256, ragged last tile
        logistic_regression_forward(x, gamma, beta, w, b, matmul_dtype=jnp.float32,
                                    max_tile_rows=256))
    out_bf16 = jax.block_until_ready(              # default bf16 MXU path
        logistic_regression_forward(x, gamma, beta, w, b, max_tile_rows=256))

    assert jnp.allclose(out_resident, ref, atol=5e-2, rtol=5e-2), "f32 mismatch"
    # Tiled/ragged path must match the single-tile path almost exactly: checks the
    # tail-row masking and multi-tile reduction independent of MXU precision.
    assert jnp.allclose(out_tiled, out_resident, atol=2e-3, rtol=1e-3), "tiling mismatch"
    assert jnp.allclose(out_bf16, ref, atol=1.5e-1, rtol=5e-2), "bf16 mismatch"

    print("KERNEL_OK")
</pallas_src>

<mosaic_0001>
module attributes {stable_mosaic.version = 11 : i64} {
  func.func @kernel(%arg0: i32, %arg1: i32, %arg2: memref<8x32xf32, #tpu.memory_space<vmem>>, %arg3: memref<1x32xf32, #tpu.memory_space<vmem>>, %arg4: memref<1x32xf32, #tpu.memory_space<vmem>>, %arg5: memref<8x32xf32, #tpu.memory_space<vmem>>, %arg6: memref<1x8xf32, #tpu.memory_space<vmem>>, %arg7: memref<8x8xf32, #tpu.memory_space<vmem>>, %arg8: memref<1x32xf32, #tpu.memory_space<vmem>>, %arg9: memref<1x32xf32, #tpu.memory_space<vmem>>, %arg10: memref<1x32xf32, #tpu.memory_space<vmem>>, %arg11: memref<8x32xf32, #tpu.memory_space<vmem>>, %arg12: memref<1x8xf32, #tpu.memory_space<vmem>>) attributes {dimension_semantics = [#tpu.dimension_semantics<arbitrary>, #tpu.dimension_semantics<arbitrary>], iteration_bounds = array<i64: 2, 1>, scalar_prefetch = 0 : i64, scratch_operands = 5 : i64, tpu.core_type = #tpu.core_type<tc>, window_params = [{transform_indices = @transform_0, window_bounds = array<i64: 8, 32>}, {pipeline_mode = #tpu.pipeline_mode<synchronous>, transform_indices = @transform_1, window_bounds = array<i64: 1, 32>}, {pipeline_mode = #tpu.pipeline_mode<synchronous>, transform_indices = @transform_2, window_bounds = array<i64: 1, 32>}, {pipeline_mode = #tpu.pipeline_mode<synchronous>, transform_indices = @transform_3, window_bounds = array<i64: 8, 32>}, {pipeline_mode = #tpu.pipeline_mode<synchronous>, transform_indices = @transform_4, window_bounds = array<i64: 1, 8>}, {transform_indices = @transform_5, window_bounds = array<i64: 8, 8>}]} {
    %c0_i32 = arith.constant 0 : i32
    %0 = arith.cmpi eq, %arg0, %c0_i32 : i32
    %1 = arith.extui %0 : i1 to i32
    %c0_i32_0 = arith.constant 0 : i32
    %2 = arith.cmpi ne, %1, %c0_i32_0 : i32
    scf.if %2 {
      %c0_i32_2 = arith.constant 0 : i32
      %6 = arith.cmpi eq, %arg1, %c0_i32_2 : i32
      %7 = arith.extui %6 : i1 to i32
      %c0_i32_3 = arith.constant 0 : i32
      %8 = arith.cmpi ne, %7, %c0_i32_3 : i32
      scf.if %8 {
        %c0_20 = arith.constant 0 : index
        %c0_21 = arith.constant 0 : index
        %35 = vector.load %arg2[%c0_20, %c0_21] : memref<8x32xf32, #tpu.memory_space<vmem>>, vector<1x32xf32>
        %c0_22 = arith.constant 0 : index
        %c0_23 = arith.constant 0 : index
        %36 = vector.load %arg10[%c0_22, %c0_23] : memref<1x32xf32, #tpu.memory_space<vmem>>, vector<1x32xf32>
        tpu.vector_store %arg10[%c0_22, %c0_23], %35 {strides = array<i32>} : memref<1x32xf32, #tpu.memory_space<vmem>>, vector<1x32xf32>,
        %cst_24 = arith.constant 0.000000e+00 : f32
        %37 = vector.broadcast %cst_24 : f32 to vector<1x32xf32>
        %c0_25 = arith.constant 0 : index
        %c0_26 = arith.constant 0 : index
        %38 = vector.load %arg8[%c0_25, %c0_26] : memref<1x32xf32, #tpu.memory_space<vmem>>, vector<1x32xf32>
        tpu.vector_store %arg8[%c0_25, %c0_26], %37 {strides = array<i32>} : memref<1x32xf32, #tpu.memory_space<vmem>>, vector<1x32xf32>,
        %cst_27 = arith.constant 0.000000e+00 : f32
        %39 = vector.broadcast %cst_27 : f32 to vector<1x32xf32>
        %c0_28 = arith.constant 0 : index
        %c0_29 = arith.constant 0 : index
        %40 = vector.load %arg9[%c0_28, %c0_29] : memref<1x32xf32, #tpu.memory_space<vmem>>, vector<1x32xf32>
        tpu.vector_store %arg9[%c0_28, %c0_29], %39 {strides = array<i32>} : memref<1x32xf32, #tpu.memory_space<vmem>>, vector<1x32xf32>,
      } else {
      }
      %c0 = arith.constant 0 : index
      %c0_4 = arith.constant 0 : index
      %9 = vector.load %arg2[%c0, %c0_4] : memref<8x32xf32, #tpu.memory_space<vmem>>, vector<8x32xf32>
      %c8_i32 = arith.constant 8 : i32
      %10 = arith.muli %arg1, %c8_i32 : i32
      %11 = tpu.iota {dimensions = array<i32: 0>} : vector<8x32xi32>
      %12 = vector.broadcast %10 : i32 to vector<8x32xi32>
      %13 = arith.addi %12, %11 : vector<8x32xi32>
      %c8_i32_5 = arith.constant 8 : i32
      %14 = vector.broadcast %c8_i32_5 : i32 to vector<8x32xi32>
      %15 = arith.cmpi slt, %13, %14 : vector<8x32xi32>
      %c0_6 = arith.constant 0 : index
      %c0_7 = arith.constant 0 : index
      %16 = vector.load %arg10[%c0_6, %c0_7] : memref<1x32xf32, #tpu.memory_space<vmem>>, vector<1x32xf32>
      %17 = vector.broadcast %16 : vector<1x32xf32> to vector<8x32xf32>
      %18 = arith.subf %9, %17 : vector<8x32xf32>
      %cst = arith.constant 0.000000e+00 : f32
      %19 = vector.broadcast %cst : f32 to vector<8x32xf32>
      %20 = arith.select %15, %18, %19 : vector<8x32xi1>, vector<8x32xf32>
      %c0_8 = arith.constant 0 : index
      %c0_9 = arith.constant 0 : index
      %21 = vector.load %arg8[%c0_8, %c0_9] : memref<1x32xf32, #tpu.memory_space<vmem>>, vector<1x32xf32>
      %cst_10 = arith.constant dense<0.000000e+00> : vector<32xf32>
      %22 = vector.multi_reduction <add>, %20, %cst_10 [0] : vector<8x32xf32> to vector<32xf32>
      %23 = vector.shape_cast %22 : vector<32xf32> to vector<1x32xf32>
      %24 = arith.addf %21, %23 : vector<1x32xf32>
      %c0_11 = arith.constant 0 : index
      %c0_12 = arith.constant 0 : index
      %25 = vector.load %arg8[%c0_11, %c0_12] : memref<1x32xf32, #tpu.memory_space<vmem>>, vector<1x32xf32>
      tpu.vector_store %arg8[%c0_11, %c0_12], %24 {strides = array<i32>} : memref<1x32xf32, #tpu.memory_space<vmem>>, vector<1x32xf32>,
      %c0_13 = arith.constant 0 : index
      %c0_14 = arith.constant 0 : index
      %26 = vector.load %arg9[%c0_13, %c0_14] : memref<1x32xf32, #tpu.memory_space<vmem>>, vector<1x32xf32>
      %27 = arith.mulf %20, %20 : vector<8x32xf32>
      %cst_15 = arith.constant dense<0.000000e+00> : vector<32xf32>
      %28 = vector.multi_reduction <add>, %27, %cst_15 [0] : vector<8x32xf32> to vector<32xf32>
      %29 = vector.shape_cast %28 : vector<32xf32> to vector<1x32xf32>
      %30 = arith.addf %26, %29 : vector<1x32xf32>
      %c0_16 = arith.constant 0 : index
      %c0_17 = arith.constant 0 : index
      %31 = vector.load %arg9[%c0_16, %c0_17] : memref<1x32xf32, #tpu.memory_space<vmem>>, vector<1x32xf32>
      tpu.vector_store %arg9[%c0_16, %c0_17], %30 {strides = array<i32>} : memref<1x32xf32, #tpu.memory_space<vmem>>, vector<1x32xf32>,
      %c0_i32_18 = arith.constant 0 : i32
      %32 = arith.cmpi eq, %arg1, %c0_i32_18 : i32
      %33 = arith.extui %32 : i1 to i32
      %c0_i32_19 = arith.constant 0 : i32
      %34 = arith.cmpi ne, %33, %c0_i32_19 : i32
      scf.if %34 {
        %c0_20 = arith.constant 0 : index
        %c0_21 = arith.constant 0 : index
        %35 = vector.load %arg8[%c0_20, %c0_21] : memref<1x32xf32, #tpu.memory_space<vmem>>, vector<1x32xf32>
        %cst_22 = arith.constant 1.250000e-01 : f32
        %36 = vector.broadcast %cst_22 : f32 to vector<1x32xf32>
        %37 = arith.mulf %35, %36 : vector<1x32xf32>
        %c0_23 = arith.constant 0 : index
        %c0_24 = arith.constant 0 : index
        %38 = vector.load %arg9[%c0_23, %c0_24] : memref<1x32xf32, #tpu.memory_space<vmem>>, vector<1x32xf32>
        %cst_25 = arith.constant 1.250000e-01 : f32
        %39 = vector.broadcast %cst_25 : f32 to vector<1x32xf32>
        %40 = arith.mulf %38, %39 : vector<1x32xf32>
        %41 = arith.mulf %37, %37 : vector<1x32xf32>
        %42 = arith.subf %40, %41 : vector<1x32xf32>
        %cst_26 = arith.constant 0.000000e+00 : f32
        %43 = vector.broadcast %cst_26 : f32 to vector<1x32xf32>
        %44 = arith.maximumf %42, %43 : vector<1x32xf32>
        %c0_27 = arith.constant 0 : index
        %c0_28 = arith.constant 0 : index
        %45 = vector.load %arg10[%c0_27, %c0_28] : memref<1x32xf32, #tpu.memory_space<vmem>>, vector<1x32xf32>
        %46 = arith.addf %45, %37 : vector<1x32xf32>
        %c0_29 = arith.constant 0 : index
        %c0_30 = arith.constant 0 : index
        %47 = vector.load %arg3[%c0_29, %c0_30] : memref<1x32xf32, #tpu.memory_space<vmem>>, vector<1x32xf32>
        %cst_31 = arith.constant 9.99999974E-6 : f32
        %48 = vector.broadcast %cst_31 : f32 to vector<1x32xf32>
        %49 = arith.addf %44, %48 : vector<1x32xf32>
        %50 = math.rsqrt %49 : vector<1x32xf32>
        %51 = arith.mulf %47, %50 : vector<1x32xf32>
        %c0_32 = arith.constant 0 : index
        %c0_33 = arith.constant 0 : index
        %52 = vector.load %arg5[%c0_32, %c0_33] : memref<8x32xf32, #tpu.memory_space<vmem>>, vector<8x32xf32>
        %53 = vector.broadcast %51 : vector<1x32xf32> to vector<8x32xf32>
        %54 = arith.mulf %52, %53 : vector<8x32xf32>
        %c0_34 = arith.constant 0 : index
        %c0_35 = arith.constant 0 : index
        %55 = vector.load %arg11[%c0_34, %c0_35] : memref<8x32xf32, #tpu.memory_space<vmem>>, vector<8x32xf32>
        tpu.vector_store %arg11[%c0_34, %c0_35], %54 {strides = array<i32>} : memref<8x32xf32, #tpu.memory_space<vmem>>, vector<8x32xf32>,
        %c0_36 = arith.constant 0 : index
        %c0_37 = arith.constant 0 : index
        %56 = vector.load %arg6[%c0_36, %c0_37] : memref<1x8xf32, #tpu.memory_space<vmem>>, vector<1x8xf32>
        %c0_38 = arith.constant 0 : index
        %c0_39 = arith.constant 0 : index
        %57 = vector.load %arg4[%c0_38, %c0_39] : memref<1x32xf32, #tpu.memory_space<vmem>>, vector<1x32xf32>
        %58 = arith.mulf %46, %51 : vector<1x32xf32>
        %59 = arith.subf %57, %58 : vector<1x32xf32>
        %c0_40 = arith.constant 0 : index
        %c0_41 = arith.constant 0 : index
        %60 = vector.load %arg5[%c0_40, %c0_41] : memref<8x32xf32, #tpu.memory_space<vmem>>, vector<8x32xf32>
        %cst_42 = arith.constant dense<0.000000e+00> : vector<1x8xf32>
        %61 = tpu.matmul %59, %60, %cst_42 {dimension_numbers = #tpu.dot_dimension_numbers<[1], [1], [0], [0], [0, 0, 1, 0], [], []>} : vector<1x32xf32>, vector<8x32xf32>, vector<1x8xf32> -> vector<1x8xf32>
        %62 = arith.addf %56, %61 : vector<1x8xf32>
        %c0_43 = arith.constant 0 : index
        %c0_44 = arith.constant 0 : index
        %63 = vector.load %arg12[%c0_43, %c0_44] : memref<1x8xf32, #tpu.memory_space<vmem>>, vector<1x8xf32>
        tpu.vector_store %arg12[%c0_43, %c0_44], %62 {strides = array<i32>} : memref<1x8xf32, #tpu.memory_space<vmem>>, vector<1x8xf32>,
      } else {
      }
    } else {
    }
    %c1_i32 = arith.constant 1 : i32
    %3 = arith.cmpi eq, %arg0, %c1_i32 : i32
    %4 = arith.extui %3 : i1 to i32
    %c0_i32_1 = arith.constant 0 : i32
    %5 = arith.cmpi ne, %4, %c0_i32_1 : i32
    scf.if %5 {
      %c0 = arith.constant 0 : index
      %c0_2 = arith.constant 0 : index
      %6 = vector.load %arg2[%c0, %c0_2] : memref<8x32xf32, #tpu.memory_space<vmem>>, vector<8x32xf32>
      %c0_3 = arith.constant 0 : index
      %c0_4 = arith.constant 0 : index
      %7 = vector.load %arg11[%c0_3, %c0_4] : memref<8x32xf32, #tpu.memory_space<vmem>>, vector<8x32xf32>
      %cst = arith.constant dense<0.000000e+00> : vector<8x8xf32>
      %8 = tpu.matmul %6, %7, %cst {dimension_numbers = #tpu.dot_dimension_numbers<[1], [1], [0], [0], [0, 0, 1, 0], [], []>} : vector<8x32xf32>, vector<8x32xf32>, vector<8x8xf32> -> vector<8x8xf32>
      %c0_5 = arith.constant 0 : index
      %c0_6 = arith.constant 0 : index
      %9 = vector.load %arg12[%c0_5, %c0_6] : memref<1x8xf32, #tpu.memory_space<vmem>>, vector<1x8xf32>
      %10 = vector.broadcast %9 : vector<1x8xf32> to vector<8x8xf32>
      %11 = arith.addf %8, %10 : vector<8x8xf32>
      %c0_7 = arith.constant 0 : index
      %c0_8 = arith.constant 0 : index
      %12 = vector.load %arg7[%c0_7, %c0_8] : memref<8x8xf32, #tpu.memory_space<vmem>>, vector<8x8xf32>
      tpu.vector_store %arg7[%c0_7, %c0_8], %11 {strides = array<i32>} : memref<8x8xf32, #tpu.memory_space<vmem>>, vector<8x8xf32>,
    } else {
    }
    return
  }
  func.func @transform_0(%arg0: i32, %arg1: i32) -> (i32, i32) {
    %c0_i32 = arith.constant 0 : i32
    %c0_i32_0 = arith.constant 0 : i32
    return %arg1, %c0_i32 : i32, i32
  }
  func.func @transform_1(%arg0: i32, %arg1: i32) -> (i32, i32) {
    %c0_i32 = arith.constant 0 : i32
    %c0_i32_0 = arith.constant 0 : i32
    %c0_i32_1 = arith.constant 0 : i32
    return %c0_i32, %c0_i32_0 : i32, i32
  }
  func.func @transform_2(%arg0: i32, %arg1: i32) -> (i32, i32) {
    %c0_i32 = arith.constant 0 : i32
    %c0_i32_0 = arith.constant 0 : i32
    %c0_i32_1 = arith.constant 0 : i32
    return %c0_i32, %c0_i32_0 : i32, i32
  }
  func.func @transform_3(%arg0: i32, %arg1: i32) -> (i32, i32) {
    %c0_i32 = arith.constant 0 : i32
    %c0_i32_0 = arith.constant 0 : i32
    %c0_i32_1 = arith.constant 0 : i32
    return %c0_i32, %c0_i32_0 : i32, i32
  }
  func.func @transform_4(%arg0: i32, %arg1: i32) -> (i32, i32) {
    %c0_i32 = arith.constant 0 : i32
    %c0_i32_0 = arith.constant 0 : i32
    %c0_i32_1 = arith.constant 0 : i32
    return %c0_i32, %c0_i32_0 : i32, i32
  }
  func.func @transform_5(%arg0: i32, %arg1: i32) -> (i32, i32) {
    %0 = arith.muli %arg0, %arg1 : i32
    %c0_i32 = arith.constant 0 : i32
    %c0_i32_0 = arith.constant 0 : i32
    return %0, %c0_i32 : i32, i32
  }
}

</mosaic_0001>

<bundles_post_ra>
// kernel: tpu_custom_call.1
= control target key start
LH: loop header
LB: loop body
LE: loop exit
PB: predicated region body
PF: predicated region fallthrough
CT: control target
= control target key end

     0   :  { %10 = vsyncpa [#allocation8], 0  ;;  %s904_s0 = inlined_call_operand.hbm [shape: f32[8,32], index: 0, kind: input, shape index: {}]   ;;  %s905_s1 = inlined_call_operand.vmem [shape: f32[1,32], index: 1, kind: input, shape index: {}]   ;;  %s906_s2 = inlined_call_operand.vmem [shape: f32[1,32], index: 2, kind: input, shape index: {}]   ;;  %s907_s3 = inlined_call_operand.vmem [shape: f32[8,32], index: 3, kind: input, shape index: {}]   ;;  %s908_s4 = inlined_call_operand.vmem [shape: f32[1,8], index: 4, kind: input, shape index: {}]   ;;  %s909_s5 = inlined_call_operand.hbm [shape: f32[8,8], index: 5, kind: output, shape index: {}]  }
   0x1   :  { %11 = vsyncpa [#allocation9], 0 }
   0x2   :  { %13 = vsyncpa [#allocation9 + $0x1], 0  ;;  %s782_s18 = smov 0   ;;  %s784_s19 = smov 0  }
   0x3   :  { %s786_s20 = smov 0  }
   0x4 LB: > { %s575_s21 = sadd.s32 4294967295, %s744_s20   ;;  %s576_s22 = sadd.s32 4294967294, %s744_s20   ;;  %s744_s20 = sphi %s786_s20, %s19_s20   ;;  %s740_s19 = sphi %s784_s19, %s920_s19   ;;  %s736_s18 = sphi %s782_s18, %s919_s18  }
   0x5   : > { %s31_s23 = sadd.s32 1, %s740_s19  ;;  %p577_p0 = scmp.ge.s32.totalorder %s744_s20, 1 }
   0x6   : > { %p33_p1 = scmp.ge.s32.totalorder %s31_s23, 2  ;;  %p174_p2 = scmp.lt.s32.totalorder %s744_s20, 3 }
   0x7   : > { %p804_p3 = scmp.eq.s32.totalorder %s575_s21, 0  ;;  %s746_s26 = smov [#allocation7]  }
   0x8   : > { %s922_s23 = smov (%p33_p1, %s31_s23), 0  ;;  %p810_p4 = pnand %p577_p0, %p174_p2 }
   0x9   : > { %s913_s24 = scalar_select %p804_p3, 1, 0 }
   0xa   : > { %s914_s25 = scalar_select %p810_p4, 1, 0 }
   0xb   : > { %s189_s27 = sshll.u32 %s746_s26, 4  ;;  %p615_p5 = pneg %p810_p4  ;;  %s190_s27 = int_to_ptr.vmem [resolvable:$true] %s189_s27 }
   0xc   : > { %s660_s6 = scalar_lea.hbm %s904_s0, 128 }
   0xd   : > { %p818_p6 = pnand %p804_p3, %p615_p5  ;;  %p661_p7 = scmp.ne.s32.totalorder %s904_s0, %s660_s6 }
   0xe   : > { %p667_p11 = scmp.lt.u32.totalorder %s660_s6, %s904_s0 }
   0xf   : > { %p662_p8 = pneg %p818_p6 }
  0x11   : > { %p663_p9 = pnand %p662_p8, %p661_p7 }
  0x13   : > { %p664_p10 = pneg %p663_p9 }
  0x15   : > { %p669_p12 = pnand %p667_p11, %p664_p10 }
  0x17   : > { %672 = shalt.err (!%p669_p12)
}
  0x18   : > { %s673_s11 = scalar_lea.vmem %s190_s27, 128  ;;  %p681_p2 = scmp.lt.s32.totalorder %s190_s27, %s190_s27 }
  0x19   : > { %p674_p13 = scmp.ne.s32.totalorder %s190_s27, %s673_s11  ;;  %p682_p5 = scmp.lt.s32.totalorder %s673_s11, %s673_s11 }
  0x1b   : > { %p676_p0 = pnand %p674_p13, %p662_p8  ;;  %p683_p3 = por %p682_p5, %p681_p2 }
  0x1d   : > { %p677_p1 = pneg %p676_p0 }
  0x1f   : > { %p684_p4 = pnand %p683_p3, %p677_p1 }
  0x21   : > { %687 = shalt.err (!%p684_p4)
}
  0x22   : > { %618 = dma.hbm_to_vmem [thread:$0]  (!%p818_p6), %s904_s0, 128, %s190_s27, [#allocation8]  }
  0x23   : > { %p916_p7 = scmp.ne.s32.totalorder %s914_s25, 0 }
  0x24   : > { %p917_p9 = scmp.ne.s32.totalorder (!%p916_p7), %s913_s24, 0 }
  0x25   : > { %214 = sbr.rel (%p916_p7) target bundleno = 566 (0x236), region = 40 }
  0x2c   : > { %727 = dma.done.wait (%p917_p9), [#allocation8], 128  }
  0x2d   : > { %729 = vsyncadd (%p917_p9), [#allocation8], 4294967168  ;;  %p581_p8 = scmp.ne.s32.totalorder %s736_s18, 0 }
  0x2e   : > { %v246_v0 = vld [vmem:[#allocation7] sm:$0x1] (!%p581_p8)  ;;  %vm247_vm0 = vcmask (!%p581_p8), 253952   ;;  %v747_v1 = vmov (!%p581_p8), 0.0   ;;  %vm268_vm1 = vcmask (!%p581_p8), 261120   ;;  %v319_v2 = vld [vmem:[%s907_s3] sm:$0xff] (!%p581_p8)  ;;  %v308_v33 = vlaneseq (!%p581_p8) }
  0x2f   : > { %241 = sbr.rel (%p581_p8) target bundleno = 322 (0x142), region = 48  ;;  %248 = vst.msk [vmem:[#allocation4] sm:$0x1] (!%p581_p8), %vm247_vm0, %v246_v0  ;;  %249 = vst.msk [vmem:[#allocation2] sm:$0x1] (!%p581_p8), %vm247_vm0, %v747_v1  ;;  %597 = vmatprep.subr.mxu0 (!%p581_p8), %v747_v1  ;;  %vm748_vm2 = vmmov (!%p581_p8), 0  }
  0x30   : > { %250 = vst.msk [vmem:[#allocation3] sm:$0x1] (!%p581_p8), %vm247_vm0, %v747_v1  ;;  %598 = vmatpush3.xpose.msk.msra.mxu0 (!%p581_p8), %vm268_vm1, %v319_v2  ;;  %599 = vmatprep.mubr.msk.f32.mxu0 (!%p581_p8), %vm748_vm2, %v747_v1  ;;  %v251_v3 = vld [vmem:[#allocation7] sm:$0xff] (!%p581_p8)  ;;  %v309_v34 = vshrl.u32 (!%p581_p8), %v308_v33, 7  ;;  %v302_v36 = vld [vmem:[%s905_s1] sm:$0x1] (!%p581_p8) }
  0x31   : > { %v316_v41 = vld [vmem:[%s906_s2] sm:$0x1] (!%p581_p8)  ;;  %vm397_vm3 = vcmask (!%p581_p8), 57344  }
  0x32   : > { %v310_v38 = vsub.s32 (!%p581_p8), 0, %v309_v34  ;;  %v315_v46 = vld [vmem:[%s908_s4] sm:$0x1] (!%p581_p8) }
  0x36   : > { %v582_v4 = vld [vmem:[#allocation4] ss:$0 sm:$0xff]  ;;  %v267_v18 = vld [vmem:[#allocation2] sm:$0x1] }
  0x37   : > { %v265_v5 = vsub.f32 %v251_v3, %v582_v4  ;;  %v279_v21 = vld [vmem:[#allocation3] sm:$0x1]  ;;  %v300_v35 = vld [vmem:[#allocation4] sm:$0x1] }
  0x39   : > { %v269_v6 = vsel %vm268_vm1, %v265_v5, 0.0  ;;  %v280_v7 = vmul.f32 %v265_v5, %v265_v5 }
  0x3a   : > { %v270_v8 = vrot.slane %v269_v6, 4 }
  0x3b   : > { %v281_v9 = vsel %vm268_vm1, %v280_v7, 0.0 }
  0x3c   : > { %v271_v10 = vadd.f32 %v270_v8, %v269_v6  ;;  %v282_v11 = vrot.slane %v281_v9, 4 }
  0x3e   : > { %v272_v12 = vrot.slane %v271_v10, 2  ;;  %v283_v13 = vadd.f32 %v282_v11, %v281_v9 }
  0x40   : > { %v273_v14 = vadd.f32 %v272_v12, %v271_v10  ;;  %v284_v15 = vrot.slane %v283_v13, 2 }
  0x42   : > { %v274_v16 = vrot.slane %v273_v14, 1  ;;  %v285_v17 = vadd.f32 %v284_v15, %v283_v13 }
  0x44   : > { %v275_v19 = vadd.f32 %v274_v16, %v273_v14  ;;  %v286_v20 = vrot.slane %v285_v17, 1 }
  0x46   : > { %v276_v22 = vadd.f32 %v275_v19, %v267_v18  ;;  %v287_v23 = vadd.f32 %v286_v20, %v285_v17 }
  0x48   : > { %278 = vst.msk [vmem:[#allocation2] sm:$0x1] %vm247_vm0, %v276_v22  ;;  %v288_v24 = vadd.f32 %v287_v23, %v279_v21 }
  0x4a   : > { %289 = vst.msk [vmem:[#allocation3] sm:$0x1] %vm247_vm0, %v288_v24 }
  0x4f   : > { %v293_v25 = vld [vmem:[#allocation2] sm:$0x1] }
  0x50   : > { %v294_v26 = vmul.f32 0.125, %v293_v25 }
  0x51   : > { %v295_v27 = vld [vmem:[#allocation3] sm:$0x1] }
  0x52   : > { %v296_v28 = vmul.f32 0.125, %v295_v27  ;;  %v297_v29 = vmul.f32 %v294_v26, %v294_v26  ;;  %v301_v37 = vadd.f32 %v300_v35, %v294_v26 }
  0x54   : > { %v298_v30 = vsub.f32 %v296_v28, %v297_v29 }
  0x56   : > { %v299_v31 = vmax.f32 %v298_v30, 0.0 }
  0x58   : > { %v303_v32 = vadd.f32 1e-05, %v299_v31 }
  0x5a   : > { %658 = vrsqrt.f32 %v303_v32 }
  0x64   : > { %v659_v39 = vpop.eup %658 }
  0x65   : > { %v305_v40 = vmul.f32 %v659_v39, %v302_v36 }
  0x67   : > { %v311_v42 = vrot.slane %v305_v40, %v310_v38  ;;  %v317_v43 = vmul.f32 %v305_v40, %v301_v37 }
  0x69   : > { %v313_v44 = vmul.f32 %v319_v2, %v311_v42  ;;  %v318_v45 = vsub.f32 %v316_v41, %v317_v43 }
  0x6b   : > { %314 = vst.msk [vmem:[#allocation5] sm:$0xff] %vm268_vm1, %v313_v44  ;;  %600 = vmatmul.mubr.msk.f32.vlgmr.msra.gmra.mrb[0].mxu0 %vm268_vm1, %v318_v45 }
 0x13e   : > { %v392_v47 = vpop.f32.mrb[0].mxu0 }
 0x13f   : > { %v396_v48 = vadd.f32 %v392_v47, %v315_v46  ;;  %v601_v49 = vpop.f32.mrb[1].mxu0 }
 0x141   : > { %398 = vst.msk [vmem:[#allocation6] sm:$0x1] %vm397_vm3, %v396_v48 }
 0x142 PF: > { %p585_p3 = scmp.ne.s32.totalorder %s736_s18, 1 }
 0x143   : > { %v404_v50 = vld [vmem:[#allocation5] sm:$0xff] (!%p585_p3)  ;;  %vm412_vm4 = vcmask (!%p585_p3), 261120   ;;  %v749_v51 = vmov (!%p585_p3), 0.0   ;;  %vm750_vm5 = vmmov (!%p585_p3), 0   ;;  %v403_v52 = vld [vmem:[#allocation7] sm:$0xff] (!%p585_p3)  ;;  %vm489_vm6 = vcmask (!%p585_p3), 64512  }
 0x144   : > { %402 = sbr.rel (%p585_p3) target bundleno = 543 (0x21f), region = 60  ;;  %602 = vmatprep.subr.mxu0 (!%p585_p3), %v749_v51  ;;  %604 = vmatprep.mubr.msk.f32.mxu0 (!%p585_p3), %vm750_vm5, %v749_v51 }
 0x145   : > { %603 = vmatpush3.xpose.msk.msra.mxu0 (!%p585_p3), %vm412_vm4, %v404_v50 }
 0x148   : > { %605 = vmatmul.mubr.msk.f32.vlgmr.msra.gmra.mrb[0].mxu0 (!%p585_p3), %vm412_vm4, %v403_v52  ;;  %v586_v53 = vld [vmem:[#allocation6] ss:$0 sm:$0xff] (!%p585_p3) }
 0x21b   : > { %v485_v54 = vpop.f32.mrb[0].mxu0 }
 0x21c   : > { %v486_v55 = vadd.f32 %v586_v53, %v485_v54  ;;  %v606_v56 = vpop.f32.mrb[1].mxu0 }
 0x21e   : > { %490 = vst.msk [vmem:[#allocation10] sm:$0xff] %vm489_vm6, %v486_v55 }
 0x21f PF: > { %p870_p4 = scmp.eq.s32.totalorder %s575_s21, 1  ;;  %s751_s28 = smov [#allocation10]  }
 0x220   : > { %s506_s29 = sshll.u32 %s751_s28, 4  ;;  %s507_s29 = int_to_ptr.vmem [resolvable:$true] %s506_s29 }
 0x221   : > { %s688_s30 = scalar_lea.vmem %s507_s29, 128  ;;  %s694_s6 = scalar_lea.vmem %s507_s29, 256 }
 0x222   : > { %p689_p6 = scmp.ne.s32.totalorder %s507_s29, %s688_s30  ;;  %p695_p12 = scmp.lt.s32.totalorder %s507_s29, %s507_s29 }
 0x223   : > { %p696_p13 = scmp.lt.s32.totalorder %s694_s6, %s688_s30 }
 0x224   : > { %p690_p10 = pnand %p689_p6, %p870_p4 }
 0x225   : > { %p697_p0 = por %p696_p13, %p695_p12 }
 0x226   : > { %p691_p11 = pneg %p690_p10 }
 0x228   : > { %p698_p1 = pnand %p697_p0, %p691_p11 }
 0x22a   : > { %701 = shalt.err (!%p698_p1)
}
 0x22b   : > { %s702_s8 = scalar_lea.hbm %s909_s5, 128 }
 0x22c   : > { %p703_p2 = scmp.ne.s32.totalorder %s909_s5, %s702_s8  ;;  %p708_p9 = scmp.lt.u32.totalorder %s702_s8, %s909_s5 }
 0x22e   : > { %p704_p5 = pnand %p703_p2, %p870_p4 }
 0x230   : > { %p705_p7 = pneg %p704_p5 }
 0x232   : > { %p710_p8 = pnand %p708_p9, %p705_p7 }
 0x234   : > { %713 = shalt.err (!%p710_p8)
}
 0x235   : > { %612 = dma.vmem_to_hbm [thread:$0]  (%p870_p4), %s507_s29, 128, %s909_s5, [#allocation9]  }
 0x236 PF: > { %p626_p3 = scmp.ge.s32.totalorder %s744_s20, 2  ;;  %p627_p6 = scmp.eq.s32.totalorder %s576_s22, 1 }
 0x238   : > { %p620_p10 = pnand %p627_p6, %p626_p3 }
 0x23a   : > { %731 = dma.done.wait (!%p620_p10), [#allocation9], 128  }
 0x23b   : > { %733 = vsyncadd (!%p620_p10), [#allocation9], 4294967168  ;;  %s19_s20 = sadd.s32 1, %s744_s20   ;;  %s919_s18 = smov %s740_s19 }
 0x23c   : > { %p16_p11 = scmp.ge.s32.totalorder %s19_s20, 4   ;;  %s920_s19 = smov %s922_s23 }
 0x23e   :  { %18 = sbr.rel (!%p16_p11) target bundleno = 4 (0x4), region = 94 }
 0x245   :  { %524 = vsyncpa [#allocation8], 1 }
 0x246   :  { %526 = vsyncpa [#allocation8 + $0x1], 1 }
 0x247   :  { %527 = vsyncpa [#allocation9], 1 }
 0x248   :  { %529 = vsyncpa [#allocation9 + $0x1], 1 }

</bundles_post_ra>
